<compile_context>
chip_gen: v7x
topology: tpu7x:2x2x1
jax: 0.10.0
libtpu: 0.0.40
codegen_flags: <defaults>
</compile_context>

<pallas_src>
import functools

import jax
import jax.numpy as jnp
from jax import lax
from jax.experimental import pallas as pl
from jax.experimental.pallas import tpu as pltpu

_LANE = 128
_ROW_ALIGN = 32  # safe sublane alignment for f32 / bf16 preds and int8 labels


def _dice_kernel(labels_ref, *refs, num_classes: int, n_heads: int):
    """One (batch, split, spatial-chunk) step.

    labels_ref : (1, 1, R, 128)  int8/int32 class labels (-1 = padding)
    preds refs : n_heads x (1, C, R, 128) probabilities (native dtype)
    tp_ref     : (1, 1, n_heads, C, 128) f32  resident accumulator (output)
    cnt_ref    : (1, 1, C, 128)          f32  resident accumulator (output)
    sp_ref     : (1, 1, n_heads, C, 128) f32  resident accumulator (output)
    """
    preds_refs = refs[:n_heads]
    tp_ref = refs[n_heads]
    cnt_ref = refs[n_heads + 1]
    sp_ref = refs[n_heads + 2]

    s = pl.program_id(2)

    @pl.when(s == 0)
    def _():
        tp_ref[...] = jnp.zeros_like(tp_ref)
        cnt_ref[...] = jnp.zeros_like(cnt_ref)
        sp_ref[...] = jnp.zeros_like(sp_ref)

    labels = labels_ref[0].astype(jnp.int32)                       # (1, R, 128)
    class_ids = lax.broadcasted_iota(jnp.int32, (num_classes, 1, _LANE), 0)
    mask_f = (labels == class_ids).astype(jnp.float32)             # (C, R, 128)

    # Per-class pixel count (shared across heads): fn = cnt - tp later.
    cnt_ref[0, 0] += jnp.sum(mask_f, axis=1)                       # (C, 128)

    for h in range(n_heads):
        p = preds_refs[h][0].astype(jnp.float32)                   # (C, R, 128)
        tp_ref[0, 0, h] += jnp.sum(mask_f * p, axis=1)             # (C, 128)
        sp_ref[0, 0, h] += jnp.sum(p, axis=1)                      # (C, 128)


def _round_up(x: int, m: int) -> int:
    return ((x + m - 1) // m) * m


def _cdiv(a: int, b: int) -> int:
    return -(-a // b)


def _dice_partial_sums(preds_list, labels, *, target_chunk_bytes: int):
    """Runs the fused kernel and returns (tp, cnt, sum_preds) per (batch, head, class)."""
    n_heads = len(preds_list)
    B, C, H, W = preds_list[0].shape
    HW = H * W

    rows = _round_up(HW, _LANE) // _LANE                # spatial rows of 128 px

    # --- chunk / split selection -------------------------------------------
    bytes_per_row = C * _LANE * sum(int(p.dtype.itemsize) for p in preds_list)
    target_rows = (target_chunk_bytes // max(1, bytes_per_row)) // _ROW_ALIGN * _ROW_ALIGN
    target_rows = max(_ROW_ALIGN, target_rows)

    n_total = _cdiv(rows, target_rows)
    # 2-way spatial split so v7x's 2 TensorCores stay busy when B is 1 / odd.
    n_splits = 2 if (B % 2 == 1 and n_total >= 2) else 1
    n_chunks = _cdiv(n_total, n_splits)
    if n_splits * n_chunks == 1:
        rows_chunk = rows
    else:
        rows_chunk = _round_up(_cdiv(rows, n_splits * n_chunks), _ROW_ALIGN)
    rows_pad = rows_chunk * n_splits * n_chunks
    hw_pad = rows_pad * _LANE

    # --- lay out inputs ----------------------------------------------------
    label_dtype = jnp.int8 if C <= 127 else jnp.int32   # 4x less label traffic
    labels_flat = labels.reshape(B, HW).astype(label_dtype)
    if hw_pad != HW:
        labels_flat = jnp.pad(labels_flat, ((0, 0), (0, hw_pad - HW)),
                              constant_values=-1)       # -1 matches no class
    labels_r = labels_flat.reshape(B, 1, rows_pad, _LANE)

    preds_r = []
    for p in preds_list:
        pf = p.reshape(B, C, HW)
        if hw_pad != HW:
            pf = jnp.pad(pf, ((0, 0), (0, 0), (0, hw_pad - HW)))
        preds_r.append(pf.reshape(B, C, rows_pad, _LANE))

    kernel = functools.partial(_dice_kernel, num_classes=C, n_heads=n_heads)

    def spatial_map(b, sp, s):
        return (b, 0, sp * n_chunks + s, 0)

    in_specs = [pl.BlockSpec((1, 1, rows_chunk, _LANE), spatial_map)]
    in_specs += [pl.BlockSpec((1, C, rows_chunk, _LANE), spatial_map)
                 for _ in range(n_heads)]

    out_shape = (
        jax.ShapeDtypeStruct((B, n_splits, n_heads, C, _LANE), jnp.float32),  # tp
        jax.ShapeDtypeStruct((B, n_splits, C, _LANE), jnp.float32),           # cnt
        jax.ShapeDtypeStruct((B, n_splits, n_heads, C, _LANE), jnp.float32),  # sum preds
    )
    out_specs = (
        pl.BlockSpec((1, 1, n_heads, C, _LANE), lambda b, sp, s: (b, sp, 0, 0, 0)),
        pl.BlockSpec((1, 1, C, _LANE), lambda b, sp, s: (b, sp, 0, 0)),
        pl.BlockSpec((1, 1, n_heads, C, _LANE), lambda b, sp, s: (b, sp, 0, 0, 0)),
    )

    tp, cnt, sp = pl.pallas_call(
        kernel,
        out_shape=out_shape,
        grid=(B, n_splits, n_chunks),
        in_specs=in_specs,
        out_specs=out_specs,
        compiler_params=pltpu.CompilerParams(
            dimension_semantics=("parallel", "parallel", "arbitrary"),
            vmem_limit_bytes=32 * 1024 * 1024,
        ),
    )(labels_r, *preds_r)

    # Tiny glue: fold the split axis and the 128 lanes (a few hundred floats).
    tp = jnp.sum(tp, axis=(1, -1))       # (B, n_heads, C)
    cnt = jnp.sum(cnt, axis=(1, -1))     # (B, C)
    sp = jnp.sum(sp, axis=(1, -1))       # (B, n_heads, C)
    return tp, cnt, sp


def dice_forward(preds, targets, delta: float = 0.5, aux_weights=(1, 0.4, 0.4),
                 *, target_chunk_bytes: int = 2 * 1024 * 1024):
    """Equivalent of Dice.forward. `preds` may be a single array or a tuple."""
    if isinstance(preds, tuple):
        pairs = list(zip(preds, aux_weights))  # zip truncates like the torch code
        preds_list = [p for p, _ in pairs]
        weights = [w for _, w in pairs]
    else:
        preds_list = [preds]
        weights = [1.0]

    num_classes = preds_list[0].shape[1]
    tp, cnt, sp = _dice_partial_sums(preds_list, targets,
                                     target_chunk_bytes=target_chunk_bytes)

    # fn = sum(onehot * (1 - p)) = cnt - tp ;  fp = sum((1 - onehot) * p) = sum(p) - tp
    fn = cnt[:, None, :] - tp
    fp = sp - tp
    dice = (tp + 1e-06) / (tp + delta * fn + (1.0 - delta) * fp + 1e-06)
    per_head = jnp.mean(jnp.sum(1.0 - dice, axis=-1) / num_classes, axis=0)  # (n_heads,)
    return sum(w * per_head[i] for i, w in enumerate(weights))


def _reference_dice(preds, labels, delta=0.5):
    """Pure-JAX reference mirroring the PyTorch code."""
    num_classes = preds.shape[1]
    onehot = jax.nn.one_hot(labels, num_classes, dtype=jnp.float32)  # (B,H,W,C)
    onehot = jnp.transpose(onehot, (0, 3, 1, 2))                     # (B,C,H,W)
    p = preds.astype(jnp.float32)
    tp = jnp.sum(onehot * p, axis=(2, 3))
    fn = jnp.sum(onehot * (1 - p), axis=(2, 3))
    fp = jnp.sum((1 - onehot) * p, axis=(2, 3))
    dice_score = (tp + 1e-06) / (tp + delta * fn + (1 - delta) * fp + 1e-06)
    dice_score = jnp.sum(1 - dice_score, axis=-1) / num_classes
    return jnp.mean(dice_score)


if __name__ == "__main__":
    key = jax.random.PRNGKey(0)
    k1, k2, k3, k4, k5, k6 = jax.random.split(key, 6)

    # Base case: B=2, C=4, 16x16 (single chunk, int8 labels, batch-parallel grid).
    B, C, H, W = 2, 4, 16, 16
    preds = jax.nn.softmax(jax.random.normal(k1, (B, C, H, W), jnp.float32), axis=1)
    labels = jax.random.randint(k2, (B, H, W), 0, C, dtype=jnp.int32)

    loss = jax.block_until_ready(dice_forward(preds, labels))
    ref = _reference_dice(preds, labels)
    assert jnp.allclose(loss, ref, atol=1e-5, rtol=1e-5), (loss, ref)

    # Tuple (auxiliary outputs) path: fused single pallas_call with 3 heads.
    loss_aux = jax.block_until_ready(dice_forward((preds, preds, preds), labels))
    ref_aux = (1 + 0.4 + 0.4) * ref
    assert jnp.allclose(loss_aux, ref_aux, atol=1e-5, rtol=1e-5), (loss_aux, ref_aux)

    # bf16 preds path (halves preds HBM traffic; f32 accumulation in-kernel).
    loss_bf16 = jax.block_until_ready(dice_forward(preds.astype(jnp.bfloat16), labels))
    ref_bf16 = _reference_dice(preds.astype(jnp.bfloat16), labels)
    assert jnp.allclose(loss_bf16, ref_bf16, atol=1e-2, rtol=1e-2), (loss_bf16, ref_bf16)

    # Multi-chunk + 2-way spatial core split (B=1, forced small chunks).
    preds2 = jax.nn.softmax(jax.random.normal(k3, (1, 4, 128, 128), jnp.float32), axis=1)
    labels2 = jax.random.randint(k4, (1, 128, 128), 0, 4, dtype=jnp.int32)
    loss2 = jax.block_until_ready(
        dice_forward(preds2, labels2, target_chunk_bytes=64 * 1024))
    ref2 = _reference_dice(preds2, labels2)
    assert jnp.allclose(loss2, ref2, atol=1e-5, rtol=1e-5), (loss2, ref2)

    # Spatial size not divisible by 128 (lane-padding path, labels padded with -1).
    preds3 = jax.nn.softmax(jax.random.normal(k5, (2, 4, 20, 20), jnp.float32), axis=1)
    labels3 = jax.random.randint(k6, (2, 20, 20), 0, 4, dtype=jnp.int32)
    loss3 = jax.block_until_ready(dice_forward(preds3, labels3))
    ref3 = _reference_dice(preds3, labels3)
    assert jnp.allclose(loss3, ref3, atol=1e-5, rtol=1e-5), (loss3, ref3)

    print("KERNEL_OK")
</pallas_src>

<mosaic_0001>
module attributes {stable_mosaic.version = 11 : i64} {
  func.func @_dice_kernel(%arg0: i32, %arg1: i32, %arg2: i32, %arg3: memref<1x1x2x128xi8, #tpu.memory_space<vmem>>, %arg4: memref<1x4x2x128xf32, #tpu.memory_space<vmem>>, %arg5: memref<1x1x1x4x128xf32, #tpu.memory_space<vmem>>, %arg6: memref<1x1x4x128xf32, #tpu.memory_space<vmem>>, %arg7: memref<1x1x1x4x128xf32, #tpu.memory_space<vmem>>) attributes {dimension_semantics = [#tpu.dimension_semantics<parallel>, #tpu.dimension_semantics<parallel>, #tpu.dimension_semantics<arbitrary>], iteration_bounds = array<i64: 2, 1, 1>, scalar_prefetch = 0 : i64, scratch_operands = 0 : i64, tpu.core_type = #tpu.core_type<tc>, window_params = [{transform_indices = @transform_0, window_bounds = array<i64: 1, 1, 2, 128>}, {transform_indices = @transform_1, window_bounds = array<i64: 1, 4, 2, 128>}, {transform_indices = @transform_2, window_bounds = array<i64: 1, 1, 1, 4, 128>}, {transform_indices = @transform_3, window_bounds = array<i64: 1, 1, 4, 128>}, {transform_indices = @transform_4, window_bounds = array<i64: 1, 1, 1, 4, 128>}]} {
    %c0_i32 = arith.constant 0 : i32
    %0 = arith.cmpi eq, %arg2, %c0_i32 : i32
    %1 = arith.extui %0 : i1 to i32
    %c0_i32_0 = arith.constant 0 : i32
    %2 = arith.cmpi ne, %1, %c0_i32_0 : i32
    scf.if %2 {
      %cst_38 = arith.constant 0.000000e+00 : f32
      %36 = vector.broadcast %cst_38 : f32 to vector<1x1x1x4x128xf32>
      %c0_39 = arith.constant 0 : index
      %c0_40 = arith.constant 0 : index
      %c0_41 = arith.constant 0 : index
      %c0_42 = arith.constant 0 : index
      %c0_43 = arith.constant 0 : index
      %37 = vector.load %arg5[%c0_39, %c0_40, %c0_41, %c0_42, %c0_43] : memref<1x1x1x4x128xf32, #tpu.memory_space<vmem>>, vector<1x1x1x4x128xf32>
      tpu.vector_store %arg5[%c0_39, %c0_40, %c0_41, %c0_42, %c0_43], %36 {strides = array<i32>} : memref<1x1x1x4x128xf32, #tpu.memory_space<vmem>>, vector<1x1x1x4x128xf32>,
      %cst_44 = arith.constant 0.000000e+00 : f32
      %38 = vector.broadcast %cst_44 : f32 to vector<1x1x4x128xf32>
      %c0_45 = arith.constant 0 : index
      %c0_46 = arith.constant 0 : index
      %c0_47 = arith.constant 0 : index
      %c0_48 = arith.constant 0 : index
      %39 = vector.load %arg6[%c0_45, %c0_46, %c0_47, %c0_48] : memref<1x1x4x128xf32, #tpu.memory_space<vmem>>, vector<1x1x4x128xf32>
      tpu.vector_store %arg6[%c0_45, %c0_46, %c0_47, %c0_48], %38 {strides = array<i32>} : memref<1x1x4x128xf32, #tpu.memory_space<vmem>>, vector<1x1x4x128xf32>,
      %cst_49 = arith.constant 0.000000e+00 : f32
      %40 = vector.broadcast %cst_49 : f32 to vector<1x1x1x4x128xf32>
      %c0_50 = arith.constant 0 : index
      %c0_51 = arith.constant 0 : index
      %c0_52 = arith.constant 0 : index
      %c0_53 = arith.constant 0 : index
      %c0_54 = arith.constant 0 : index
      %41 = vector.load %arg7[%c0_50, %c0_51, %c0_52, %c0_53, %c0_54] : memref<1x1x1x4x128xf32, #tpu.memory_space<vmem>>, vector<1x1x1x4x128xf32>
      tpu.vector_store %arg7[%c0_50, %c0_51, %c0_52, %c0_53, %c0_54], %40 {strides = array<i32>} : memref<1x1x1x4x128xf32, #tpu.memory_space<vmem>>, vector<1x1x1x4x128xf32>,
    } else {
    }
    %c0 = arith.constant 0 : index
    %c0_1 = arith.constant 0 : index
    %c0_2 = arith.constant 0 : index
    %c0_3 = arith.constant 0 : index
    %3 = vector.load %arg3[%c0, %c0_1, %c0_2, %c0_3] : memref<1x1x2x128xi8, #tpu.memory_space<vmem>>, vector<1x1x2x128xi8>
    %4 = vector.shape_cast %3 : vector<1x1x2x128xi8> to vector<1x2x128xi8>
    %5 = arith.extsi %4 : vector<1x2x128xi8> to vector<1x2x128xi32>
    %6 = tpu.iota {dimensions = array<i32: 0>} : vector<4x1x128xi32>
    %7 = vector.broadcast %5 : vector<1x2x128xi32> to vector<4x2x128xi32>
    %8 = vector.broadcast %6 : vector<4x1x128xi32> to vector<4x2x128xi32>
    %9 = arith.cmpi eq, %7, %8 : vector<4x2x128xi32>
    %10 = arith.extui %9 : vector<4x2x128xi1> to vector<4x2x128xi32>
    %11 = arith.sitofp %10 : vector<4x2x128xi32> to vector<4x2x128xf32>
    %c0_4 = arith.constant 0 : index
    %c0_5 = arith.constant 0 : index
    %c0_6 = arith.constant 0 : index
    %c0_7 = arith.constant 0 : index
    %12 = vector.load %arg6[%c0_4, %c0_5, %c0_6, %c0_7] : memref<1x1x4x128xf32, #tpu.memory_space<vmem>>, vector<1x1x4x128xf32>
    %13 = vector.shape_cast %12 : vector<1x1x4x128xf32> to vector<4x128xf32>
    %cst = arith.constant dense<0.000000e+00> : vector<4x128xf32>
    %14 = vector.multi_reduction <add>, %11, %cst [1] : vector<4x2x128xf32> to vector<4x128xf32>
    %15 = arith.addf %13, %14 : vector<4x128xf32>
    %c0_8 = arith.constant 0 : index
    %c0_9 = arith.constant 0 : index
    %c0_10 = arith.constant 0 : index
    %c0_11 = arith.constant 0 : index
    %16 = vector.load %arg6[%c0_8, %c0_9, %c0_10, %c0_11] : memref<1x1x4x128xf32, #tpu.memory_space<vmem>>, vector<1x1x4x128xf32>
    %17 = vector.shape_cast %16 : vector<1x1x4x128xf32> to vector<4x128xf32>
    %18 = vector.shape_cast %15 : vector<4x128xf32> to vector<1x1x4x128xf32>
    tpu.vector_store %arg6[%c0_8, %c0_9, %c0_10, %c0_11], %18 {strides = array<i32>} : memref<1x1x4x128xf32, #tpu.memory_space<vmem>>, vector<1x1x4x128xf32>,
    %c0_12 = arith.constant 0 : index
    %c0_13 = arith.constant 0 : index
    %c0_14 = arith.constant 0 : index
    %c0_15 = arith.constant 0 : index
    %19 = vector.load %arg4[%c0_12, %c0_13, %c0_14, %c0_15] : memref<1x4x2x128xf32, #tpu.memory_space<vmem>>, vector<1x4x2x128xf32>
    %20 = vector.shape_cast %19 : vector<1x4x2x128xf32> to vector<4x2x128xf32>
    %c0_16 = arith.constant 0 : index
    %c0_17 = arith.constant 0 : index
    %c0_18 = arith.constant 0 : index
    %c0_19 = arith.constant 0 : index
    %c0_20 = arith.constant 0 : index
    %21 = vector.load %arg5[%c0_16, %c0_17, %c0_18, %c0_19, %c0_20] : memref<1x1x1x4x128xf32, #tpu.memory_space<vmem>>, vector<1x1x1x4x128xf32>
    %22 = vector.shape_cast %21 : vector<1x1x1x4x128xf32> to vector<4x128xf32>
    %23 = arith.mulf %11, %20 : vector<4x2x128xf32>
    %cst_21 = arith.constant dense<0.000000e+00> : vector<4x128xf32>
    %24 = vector.multi_reduction <add>, %23, %cst_21 [1] : vector<4x2x128xf32> to vector<4x128xf32>
    %25 = arith.addf %22, %24 : vector<4x128xf32>
    %c0_22 = arith.constant 0 : index
    %c0_23 = arith.constant 0 : index
    %c0_24 = arith.constant 0 : index
    %c0_25 = arith.constant 0 : index
    %c0_26 = arith.constant 0 : index
    %26 = vector.load %arg5[%c0_22, %c0_23, %c0_24, %c0_25, %c0_26] : memref<1x1x1x4x128xf32, #tpu.memory_space<vmem>>, vector<1x1x1x4x128xf32>
    %27 = vector.shape_cast %26 : vector<1x1x1x4x128xf32> to vector<4x128xf32>
    %28 = vector.shape_cast %25 : vector<4x128xf32> to vector<1x1x1x4x128xf32>
    tpu.vector_store %arg5[%c0_22, %c0_23, %c0_24, %c0_25, %c0_26], %28 {strides = array<i32>} : memref<1x1x1x4x128xf32, #tpu.memory_space<vmem>>, vector<1x1x1x4x128xf32>,
    %c0_27 = arith.constant 0 : index
    %c0_28 = arith.constant 0 : index
    %c0_29 = arith.constant 0 : index
    %c0_30 = arith.constant 0 : index
    %c0_31 = arith.constant 0 : index
    %29 = vector.load %arg7[%c0_27, %c0_28, %c0_29, %c0_30, %c0_31] : memref<1x1x1x4x128xf32, #tpu.memory_space<vmem>>, vector<1x1x1x4x128xf32>
    %30 = vector.shape_cast %29 : vector<1x1x1x4x128xf32> to vector<4x128xf32>
    %cst_32 = arith.constant dense<0.000000e+00> : vector<4x128xf32>
    %31 = vector.multi_reduction <add>, %20, %cst_32 [1] : vector<4x2x128xf32> to vector<4x128xf32>
    %32 = arith.addf %30, %31 : vector<4x128xf32>
    %c0_33 = arith.constant 0 : index
    %c0_34 = arith.constant 0 : index
    %c0_35 = arith.constant 0 : index
    %c0_36 = arith.constant 0 : index
    %c0_37 = arith.constant 0 : index
    %33 = vector.load %arg7[%c0_33, %c0_34, %c0_35, %c0_36, %c0_37] : memref<1x1x1x4x128xf32, #tpu.memory_space<vmem>>, vector<1x1x1x4x128xf32>
    %34 = vector.shape_cast %33 : vector<1x1x1x4x128xf32> to vector<4x128xf32>
    %35 = vector.shape_cast %32 : vector<4x128xf32> to vector<1x1x1x4x128xf32>
    tpu.vector_store %arg7[%c0_33, %c0_34, %c0_35, %c0_36, %c0_37], %35 {strides = array<i32>} : memref<1x1x1x4x128xf32, #tpu.memory_space<vmem>>, vector<1x1x1x4x128xf32>,
    return
  }
  func.func @transform_0(%arg0: i32, %arg1: i32, %arg2: i32) -> (i32, i32, i32, i32) {
    %c1_i32 = arith.constant 1 : i32
    %0 = arith.muli %arg1, %c1_i32 : i32
    %1 = arith.addi %0, %arg2 : i32
    %c0_i32 = arith.constant 0 : i32
    %c0_i32_0 = arith.constant 0 : i32
    %c0_i32_1 = arith.constant 0 : i32
    return %arg0, %c0_i32, %1, %c0_i32_0 : i32, i32, i32, i32
  }
  func.func @transform_1(%arg0: i32, %arg1: i32, %arg2: i32) -> (i32, i32, i32, i32) {
    %c1_i32 = arith.constant 1 : i32
    %0 = arith.muli %arg1, %c1_i32 : i32
    %1 = arith.addi %0, %arg2 : i32
    %c0_i32 = arith.constant 0 : i32
    %c0_i32_0 = arith.constant 0 : i32
    %c0_i32_1 = arith.constant 0 : i32
    return %arg0, %c0_i32, %1, %c0_i32_0 : i32, i32, i32, i32
  }
  func.func @transform_2(%arg0: i32, %arg1: i32, %arg2: i32) -> (i32, i32, i32, i32, i32) {
    %c0_i32 = arith.constant 0 : i32
    %c0_i32_0 = arith.constant 0 : i32
    %c0_i32_1 = arith.constant 0 : i32
    %c0_i32_2 = arith.constant 0 : i32
    return %arg0, %arg1, %c0_i32, %c0_i32_0, %c0_i32_1 : i32, i32, i32, i32, i32
  }
  func.func @transform_3(%arg0: i32, %arg1: i32, %arg2: i32) -> (i32, i32, i32, i32) {
    %c0_i32 = arith.constant 0 : i32
    %c0_i32_0 = arith.constant 0 : i32
    %c0_i32_1 = arith.constant 0 : i32
    return %arg0, %arg1, %c0_i32, %c0_i32_0 : i32, i32, i32, i32
  }
  func.func @transform_4(%arg0: i32, %arg1: i32, %arg2: i32) -> (i32, i32, i32, i32, i32) {
    %c0_i32 = arith.constant 0 : i32
    %c0_i32_0 = arith.constant 0 : i32
    %c0_i32_1 = arith.constant 0 : i32
    %c0_i32_2 = arith.constant 0 : i32
    return %arg0, %arg1, %c0_i32, %c0_i32_0, %c0_i32_1 : i32, i32, i32, i32, i32
  }
}

</mosaic_0001>

<bundles_post_ra>
// kernel: tpu_custom_call.1
= control target key start
LH: loop header
LB: loop body
LE: loop exit
PB: predicated region body
PF: predicated region fallthrough
CT: control target
= control target key end

     0   :  { %10 = vsyncpa [#allocation3], 0  ;;  %s1383_s0 = inlined_call_operand.hbm [shape: s8[2,1,2,128], index: 0, kind: input, shape index: {}]   ;;  %s1384_s1 = inlined_call_operand.hbm [shape: f32[2,4,2,128], index: 1, kind: input, shape index: {}]   ;;  %s1385_s2 = inlined_call_operand.hbm [shape: f32[2,1,1,4,128], index: 2, kind: output, shape index: {0}]   ;;  %s1386_s3 = inlined_call_operand.hbm [shape: f32[2,1,4,128], index: 3, kind: output, shape index: {1}]   ;;  %s1387_s4 = inlined_call_operand.hbm [shape: f32[2,1,1,4,128], index: 4, kind: output, shape index: {2}]  }
   0x1   :  { %12 = vsyncpa [#allocation3 + $0x1], 0 }
   0x2   :  { %13 = vsyncpa [#allocation6], 0 }
   0x3   :  { %15 = vsyncpa [#allocation6 + $0x1], 0 }
   0x4   :  { %16 = vsyncpa [#allocation4], 0 }
   0x5   :  { %18 = vsyncpa [#allocation4 + $0x1], 0 }
   0x6   :  { %19 = vsyncpa [#allocation9], 0 }
   0x7   :  { %21 = vsyncpa [#allocation9 + $0x1], 0  ;;  %s1027_s15 = smov 0   ;;  %s1029_s16 = smov 0  }
   0x8   :  { %s1031_s17 = smov 0   ;;  %s1033_s18 = smov 0  }
   0x9   :  { %s1035_s19 = smov 0   ;;  %s1037_s20 = smov 0  }
   0xa LB: > { %s1058_s21 = sadd.s32 4294967295, %s992_s20   ;;  %s681_s22 = sadd.s32 4294967294, %s992_s20   ;;  %s992_s20 = sphi %s1037_s20, %s27_s20   ;;  %s988_s19 = sphi %s1035_s19, %s1406_s19   ;;  %s984_s18 = sphi %s1033_s18, %s1405_s18   ;;  %s980_s17 = sphi %s1031_s17, %s1404_s17   ;;  %s976_s16 = sphi %s1029_s16, %s1403_s16   ;;  %s972_s15 = sphi %s1027_s15, %s1402_s15  }
   0xb   : > { %s46_s23 = sadd.s32 1, %s988_s19  ;;  %s57_s24 = sadd.s32 1, %s980_s17 }
   0xc   : > { %p48_p0 = scmp.ge.s32.totalorder %s46_s23, 2  ;;  %p64_p1 = scmp.ne.s32.totalorder %s980_s17, %s976_s16 }
   0xd   : > { %p65_p2 = scmp.eq.s32.totalorder %s992_s20, 0  ;;  %p70_p3 = scmp.ne.s32.totalorder %s976_s16, %s972_s15 }
   0xe   : > { %s1408_s23 = smov (%p48_p0, %s46_s23), 0  ;;  %p71_p5 = scmp.eq.s32.totalorder %s1058_s21, 0 }
   0xf   : > { %p1070_p4 = por %p65_p2, %p64_p1  ;;  %s52_s26 = ssub.s32 %s988_s19, %s1408_s23 }
  0x10   : > { %p126_p6 = scmp.eq.s32.totalorder %s1058_s21, 1  ;;  %p55_p7 = scmp.eq.s32.totalorder %s52_s26, 0 }
  0x11   : > { %p1078_p8 = por %p71_p5, %p70_p3  ;;  %p132_p10 = scmp.eq.s32.totalorder %s681_s22, 1 }
  0x12   : > { %p1082_p9 = por %p126_p6, %p64_p1  ;;  %p733_p13 = scmp.lt.s32.totalorder %s992_s20, 2 }
  0x13   : > { %s1391_s27 = scalar_select %p1078_p8, 1, 0 }
  0x14   : > { %s1392_s28 = scalar_select %p1082_p9, 1, 0 }
  0x15   : > { %s1089_s29 = scalar_select %p55_p7, %s980_s17, %s57_s24  }
  0x16   : > { %p1091_p11 = por %p132_p10, %p70_p3  ;;  %s1098_s5 = sand.u32 1, %s980_s17  }
  0x17   : > { %s684_s6 = sshll.u32 %s988_s19, 4  ;;  %s211_s7 = scalar_lea.vmem [#allocation2], %s1098_s5 }
  0x18   : > { %s1393_s30 = scalar_select %p1091_p11, 1, 0 }
  0x19   : > { %s220_s8 = sshll.u32 %s211_s7, 4  ;;  %s1105_s11 = scalar_lea.hbm %s1383_s0, %s684_s6  ;;  %s1107_s8 = int_to_ptr.vmem [resolvable:$true] %s220_s8 }
  0x1a   : > { %p1111_p0 = pnand %p733_p13, %p1070_p4  ;;  %s685_s13 = sshll.u32 %s1098_s5, 3 }
  0x1b   : > { %s209_s14 = scalar_lea.sflag [#allocation3], %s1098_s5  ;;  %s786_s24 = scalar_lea.hbm %s1105_s11, 16 }
  0x1c   : > { %p787_p3 = scmp.ne.s32.totalorder %s1105_s11, %s786_s24  ;;  %p788_p5 = pneg %p1111_p0 }
  0x1d   : > { %s791_s6 = scalar_lea.hbm %s1383_s0, 32  ;;  %p792_p4 = scmp.lt.u32.totalorder %s1105_s11, %s1383_s0 }
  0x1e   : > { %p789_p6 = pnand %p788_p5, %p787_p3  ;;  %p793_p10 = scmp.lt.u32.totalorder %s791_s6, %s786_s24 }
  0x1f   : > { %p795_p12 = scmp.lt.u32.totalorder %s786_s24, %s1105_s11 }
  0x20   : > { %p790_p7 = pneg %p789_p6  ;;  %p794_p13 = por %p793_p10, %p792_p4 }
  0x22   : > { %p796_p1 = por %p795_p12, %p794_p13 }
  0x24   : > { %p797_p2 = pnand %p796_p1, %p790_p7 }
  0x26   : > { %800 = shalt.err (!%p797_p2)
}
  0x27   : > { %s801_s10 = scalar_lea.vmem %s1107_s8, 16  ;;  %s994_s26 = smov [#allocation2]  }
  0x28   : > { %p802_p3 = scmp.ne.s32.totalorder %s1107_s8, %s801_s10  ;;  %s806_s25 = sshll.u32 %s994_s26, 4  ;;  %s807_s25 = int_to_ptr.vmem [resolvable:$false] %s806_s25 }
  0x29   : > { %s808_s7 = scalar_lea.vmem %s807_s25, 32  ;;  %p809_p9 = scmp.lt.s32.totalorder %s1107_s8, %s807_s25 }
  0x2a   : > { %p804_p6 = pnand %p802_p3, %p788_p5  ;;  %p810_p4 = scmp.lt.s32.totalorder %s808_s7, %s801_s10 }
  0x2c   : > { %p805_p11 = pneg %p804_p6  ;;  %p811_p10 = por %p810_p4, %p809_p9 }
  0x2e   : > { %p812_p12 = pnand %p811_p10, %p805_p11 }
  0x30   : > { %815 = shalt.err (!%p812_p12)
}
  0x31   : > { %719 = dma.hbm_to_vmem [thread:$0]  (!%p1111_p0), %s1105_s11, 16, %s1107_s8, %s209_s14  }
  0x32   : > { %p1395_p1 = scmp.lt.s32.totalorder %s992_s20, 3  ;;  %p1396_p2 = scmp.ge.s32.totalorder %s992_s20, 1 }
  0x33   : > { %s705_s6 = sshll.u32 %s988_s19, 7  ;;  %s231_s9 = scalar_lea.vmem [#allocation5], %s685_s13 }
  0x34   : > { %p1148_p7 = pnand %p1396_p2, %p1395_p1  ;;  %s240_s10 = sshll.u32 %s231_s9, 4  ;;  %s1160_s10 = int_to_ptr.vmem [resolvable:$true] %s240_s10 }
  0x35   : > { %s1158_s7 = scalar_lea.hbm %s1384_s1, %s705_s6  ;;  %s228_s8 = scalar_lea.sflag [#allocation6], %s1098_s5 }
  0x36   : > { %s816_s11 = scalar_lea.hbm %s1158_s7, 128  ;;  %s821_s9 = scalar_lea.hbm %s1384_s1, 256 }
  0x37   : > { %p817_p9 = scmp.ne.s32.totalorder %s1158_s7, %s816_s11  ;;  %p822_p3 = scmp.lt.u32.totalorder %s1158_s7, %s1384_s1 }
  0x38   : > { %p823_p6 = scmp.lt.u32.totalorder %s821_s9, %s816_s11  ;;  %p825_p10 = scmp.lt.u32.totalorder %s816_s11, %s1158_s7 }
  0x39   : > { %p819_p11 = pnand %p817_p9, %p788_p5 }
  0x3a   : > { %p824_p4 = por %p823_p6, %p822_p3 }
  0x3b   : > { %p820_p13 = pneg %p819_p11 }
  0x3c   : > { %p826_p12 = por %p825_p10, %p824_p4 }
  0x3e   : > { %p827_p1 = pnand %p826_p12, %p820_p13 }
  0x40   : > { %830 = shalt.err (!%p827_p1)
}
  0x41   : > { %s831_s25 = scalar_lea.vmem %s1160_s10, 128  ;;  %s995_s13 = smov [#allocation5]  }
  0x42   : > { %p832_p2 = scmp.ne.s32.totalorder %s1160_s10, %s831_s25  ;;  %s836_s14 = sshll.u32 %s995_s13, 4  ;;  %s837_s14 = int_to_ptr.vmem [resolvable:$false] %s836_s14 }
  0x43   : > { %s838_s26 = scalar_lea.vmem %s837_s14, 256  ;;  %p839_p8 = scmp.lt.s32.totalorder %s1160_s10, %s837_s14 }
  0x44   : > { %p834_p9 = pnand %p832_p2, %p788_p5  ;;  %p840_p3 = scmp.lt.s32.totalorder %s838_s26, %s831_s25 }
  0x46   : > { %p835_p11 = pneg %p834_p9  ;;  %p841_p6 = por %p840_p3, %p839_p8 }
  0x48   : > { %p842_p4 = pnand %p841_p6, %p835_p11 }
  0x4a   : > { %845 = shalt.err (!%p842_p4)
}
  0x4b   : > { %s996_s11 = smov 32   ;;  %s997_s9 = smov 2  }
  0x4c   : > { %722 = dma.hbm_to_vmem [thread:$0]  (!%p1111_p0), %s1158_s7, 128, %s1160_s10, %s228_s8, %s996_s11, %s996_s11, %s997_s9  }
  0x4d   : > { %252 = sbr.rel (%p1148_p7) target bundleno = 178 (0xb2), region = 28  ;;  %s1191_s6 = sand.u32 (!%p1148_p7), 1, %s976_s16  }
  0x4e   : > { %s255_s25 = scalar_lea.sflag (!%p1148_p7), [#allocation3], %s1191_s6  ;;  %s257_s13 = scalar_lea.vmem (!%p1148_p7), [#allocation2], %s1191_s6 }
  0x4f   : > { %p1398_p8 = scmp.ne.s32.totalorder (!%p1148_p7), %s1391_s27, 0 }
  0x54   : > { %955 = dma.done.wait (%p1398_p8), %s255_s25, 16  }
  0x55   : > { %957 = vsyncadd (%p1398_p8), %s255_s25, 4294967280  ;;  %s689_s5 = sshll.u32 %s1191_s6, 3  ;;  %s263_s12 = scalar_lea.sflag [#allocation6], %s1191_s6 }
  0x56   : > { %s266_s24 = scalar_lea.vmem [#allocation5], %s689_s5 }
  0x57   : > { %959 = dma.done.wait (%p1398_p8), %s263_s12, 128  }
  0x58   : > { %961 = vsyncadd (%p1398_p8), %s263_s12, 4294967168  ;;  %s690_s10 = sshll.u32 %s1191_s6, 2  ;;  %v998_v0 = vmov 0.0   ;;  %vm329_vm0 = vcmask 1041408   ;;  %v314_v1 = vld [vmem:[%s257_s13] sm:$0x1] }
  0x59   : > { %s1206_s7 = scalar_lea.vmem [#allocation8], %s690_s10  ;;  %s1209_s8 = scalar_lea.vmem [#allocation7], %s690_s10  ;;  %v371_v2 = vld [vmem:[%s266_s24] sm:$0x3]  ;;  %v372_v3 = vld [vmem:[%s266_s24 + $0x2] sm:$0x3]  ;;  %v315_v4 = vunpack.c.0.s8 %v314_v1 }
  0x5a   : > { %312 = vst [vmem:[%s1206_s7] sm:$0xf] %v998_v0  ;;  %311 = vst [vmem:[%s1209_s8] sm:$0xf] %v998_v0  ;;  %s1212_s14 = scalar_lea.vmem [#allocation10], %s690_s10  ;;  %v1216_v5 = vsel %vm329_vm0, %v371_v2, 0.0  ;;  %v1219_v6 = vsel %vm329_vm0, %v372_v3, 0.0  ;;  %vm362_vm5 = vcmask 1041409  }
  0x5b   : > { %313 = vst [vmem:[%s1212_s14] sm:$0xf] %v998_v0  ;;  %v420_v7 = vrot.slane %v1216_v5, 4  ;;  %v427_v8 = vrot.slane %v1219_v6, 4  ;;  %vm316_vm1 = vcmp.eq.s32.totalorder %v315_v4, 0  ;;  %vm317_vm2 = vcmp.eq.s32.totalorder %v315_v4, 1  ;;  %s462_s27 = sand.u32 1, %s1058_s21  }
  0x5c   : > { %vm318_vm3 = vcmp.eq.s32.totalorder %v315_v4, 2  ;;  %vm319_vm4 = vcmp.eq.s32.totalorder %v315_v4, 3  ;;  %v1223_v9 = vld [vmem:[%s266_s24 + $0x4] sm:$0x3]  ;;  %v693_v10 = vsel %vm316_vm1, 1.0, %v998_v0  ;;  %v694_v11 = vsel %vm317_vm2, 1.0, %v998_v0 }
  0x5d   : > { %v695_v12 = vsel %vm318_vm3, 1.0, %v998_v0  ;;  %v696_v13 = vsel %vm319_vm4, 1.0, %v998_v0  ;;  %v1225_v14 = vld [vmem:[%s266_s24 + $0x6] sm:$0x3]  ;;  %v330_v15 = vsel %vm329_vm0, %v693_v10, 0.0  ;;  %v337_v16 = vsel %vm329_vm0, %v694_v11, 0.0 }
  0x5e   : > { %v344_v17 = vsel %vm329_vm0, %v695_v12, 0.0  ;;  %v351_v18 = vsel %vm329_vm0, %v696_v13, 0.0  ;;  %v331_v19 = vrot.slane %v330_v15, 4  ;;  %v338_v20 = vrot.slane %v337_v16, 4  ;;  %s1249_s26 = sshll.u32 %s984_s18, 6  ;;  %s496_s11 = sshll.u32 %s1206_s7, 4  ;;  %s1260_s11 = int_to_ptr.vmem [resolvable:$true] %s496_s11 }
  0x5f   : > { %v345_v21 = vrot.slane %v344_v17, 4  ;;  %v352_v22 = vrot.slane %v351_v18, 4  ;;  %v376_v23 = vmul.f32 %v693_v10, %v371_v2  ;;  %v377_v24 = vmul.f32 %v694_v11, %v372_v3  ;;  %s1258_s25 = scalar_lea.hbm %s1386_s3, %s1249_s26  ;;  %s482_s13 = sshll.u32 %s1209_s8, 4  ;;  %s1304_s13 = int_to_ptr.vmem [resolvable:$true] %s482_s13 }
  0x60   : > { %v378_v25 = vmul.f32 %v695_v12, %v1223_v9  ;;  %v379_v26 = vmul.f32 %v696_v13, %v1225_v14  ;;  %v332_v27 = vadd.f32 %v331_v19, %v330_v15  ;;  %v339_v28 = vadd.f32 %v338_v20, %v337_v16  ;;  %s1271_s5 = scalar_lea.sflag [#allocation9], %s462_s27  ;;  %s846_s12 = scalar_lea.vmem %s1260_s11, 64 }
  0x61   : > { %v346_v29 = vadd.f32 %v345_v21, %v344_v17  ;;  %v353_v30 = vadd.f32 %v352_v22, %v351_v18  ;;  %vm364_vm6 = vcmask 1042434   ;;  %vm366_vm7 = vcmask 1043459   ;;  %v328_v3 = vld [vmem:[%s1206_s7] sm:$0xf]  ;;  %p847_p0 = scmp.ne.s32.totalorder %s1260_s11, %s846_s12  ;;  %p1399_p5 = scmp.ne.s32.totalorder %s1392_s28, 0 }
  0x62   : > { %v380_v31 = vsel %vm329_vm0, %v376_v23, 0.0  ;;  %v387_v32 = vsel %vm329_vm0, %v377_v24, 0.0  ;;  %v394_v33 = vsel %vm329_vm0, %v378_v25, 0.0  ;;  %v401_v34 = vsel %vm329_vm0, %v379_v26, 0.0  ;;  %v375_v25 = vld [vmem:[%s1209_s8] sm:$0xf] }
  0x63   : > { %v333_v35 = vrot.slane %v332_v27, 2  ;;  %v340_v36 = vrot.slane %v339_v28, 2  ;;  %v347_v37 = vrot.slane %v346_v29, 2  ;;  %v354_v38 = vrot.slane %v353_v30, 2  ;;  %p848_p7 = pnand %p847_p0, %p1399_p5  ;;  %s999_s24 = smov [#allocation8]  }
  0x64   : > { %v381_v39 = vrot.slane %v380_v31, 4  ;;  %v388_v40 = vrot.slane %v387_v32, 4  ;;  %v395_v41 = vrot.slane %v394_v33, 4  ;;  %v402_v42 = vrot.slane %v401_v34, 4  ;;  %s850_s10 = sshll.u32 %s999_s24, 4  ;;  %s851_s10 = int_to_ptr.vmem [resolvable:$false] %s850_s10 }
  0x65   : > { %v334_v43 = vadd.f32 %v333_v35, %v332_v27  ;;  %v341_v44 = vadd.f32 %v340_v36, %v339_v28  ;;  %v348_v45 = vadd.f32 %v347_v37, %v346_v29  ;;  %v355_v46 = vadd.f32 %v354_v38, %v353_v30  ;;  %p849_p13 = pneg %p848_p7  ;;  %p853_p10 = scmp.lt.s32.totalorder %s1260_s11, %s851_s10 }
  0x66   : > { %v382_v47 = vadd.f32 %v381_v39, %v380_v31  ;;  %v389_v48 = vadd.f32 %v388_v40, %v387_v32  ;;  %v396_v49 = vadd.f32 %v395_v41, %v394_v33  ;;  %v403_v50 = vadd.f32 %v402_v42, %v401_v34 }
  0x67   : > { %v335_v51 = vrot.slane %v334_v43, 1  ;;  %v342_v52 = vrot.slane %v341_v44, 1  ;;  %v349_v53 = vrot.slane %v348_v45, 1  ;;  %v356_v54 = vrot.slane %v355_v46, 1 }
  0x68   : > { %v383_v55 = vrot.slane %v382_v47, 2  ;;  %v390_v56 = vrot.slane %v389_v48, 2  ;;  %v397_v57 = vrot.slane %v396_v49, 2  ;;  %v404_v58 = vrot.slane %v403_v50, 2 }
  0x69   : > { %v336_v59 = vadd.f32 %v335_v51, %v334_v43  ;;  %v343_v60 = vadd.f32 %v342_v52, %v341_v44  ;;  %v350_v61 = vadd.f32 %v349_v53, %v348_v45  ;;  %v357_v62 = vadd.f32 %v356_v54, %v355_v46 }
  0x6a   : > { %v384_v63 = vadd.f32 %v383_v55, %v382_v47  ;;  %v391_v0 = vadd.f32 %v390_v56, %v389_v48  ;;  %v398_v1 = vadd.f32 %v397_v57, %v396_v49  ;;  %v405_v2 = vadd.f32 %v404_v58, %v403_v50 }
  0x6b   : > { %v363_v4 = vsel %vm362_vm5, %v343_v60, %v336_v59  ;;  %v421_v10 = vadd.f32 %v420_v7, %v1216_v5  ;;  %v428_v11 = vadd.f32 %v427_v8, %v1219_v6  ;;  %v433_v12 = vsel %vm329_vm0, %v1223_v9, 0.0 }
  0x6c   : > { %v365_v13 = vsel %vm364_vm6, %v350_v61, %v363_v4  ;;  %v385_v15 = vrot.slane %v384_v63, 1  ;;  %v392_v16 = vrot.slane %v391_v0, 1  ;;  %v399_v17 = vrot.slane %v398_v1, 1 }
  0x6d   : > { %v367_v5 = vsel %vm366_vm7, %v357_v62, %v365_v13  ;;  %v406_v7 = vrot.slane %v405_v2, 1  ;;  %v422_v18 = vrot.slane %v421_v10, 2  ;;  %v429_v6 = vrot.slane %v428_v11, 2 }
  0x6e   : > { %v369_v8 = vadd.f32 %v367_v5, %v328_v3  ;;  %v386_v19 = vadd.f32 %v385_v15, %v384_v63  ;;  %v393_v9 = vadd.f32 %v392_v16, %v391_v0  ;;  %v400_v20 = vadd.f32 %v399_v17, %v398_v1 }
  0x6f   : > { %v407_v21 = vadd.f32 %v406_v7, %v405_v2  ;;  %v423_v22 = vadd.f32 %v422_v18, %v421_v10  ;;  %v430_v23 = vadd.f32 %v429_v6, %v428_v11  ;;  %v434_v24 = vrot.slane %v433_v12, 4 }
  0x70   : > { %370 = vst [vmem:[%s1206_s7] sm:$0xf] %v369_v8  ;;  %v412_v26 = vsel %vm362_vm5, %v393_v9, %v386_v19  ;;  %v440_v27 = vsel %vm329_vm0, %v1225_v14, 0.0  ;;  %s852_s7 = scalar_lea.vmem %s851_s10, 128 }
  0x71   : > { %v413_v28 = vsel %vm364_vm6, %v400_v20, %v412_v26  ;;  %v424_v29 = vrot.slane %v423_v22, 1  ;;  %v431_v30 = vrot.slane %v430_v23, 1  ;;  %v435_v31 = vadd.f32 %v434_v24, %v433_v12  ;;  %p854_p12 = scmp.lt.s32.totalorder %s852_s7, %s846_s12 }
  0x73   : > { %p855_p1 = por %p854_p12, %p853_p10 }
  0x75   : > { %p856_p2 = pnand %p855_p1, %p849_p13 }
  0x77   : > { %859 = shalt.err (!%p856_p2)
}
  0x78   : > { %s860_s21 = scalar_lea.hbm %s1258_s25, 64  ;;  %s864_s9 = scalar_lea.hbm %s1386_s3, 128 }
  0x79   : > { %p861_p9 = scmp.ne.s32.totalorder %s1258_s25, %s860_s21  ;;  %p865_p6 = scmp.lt.u32.totalorder %s1258_s25, %s1386_s3 }
  0x7a   : > { %p866_p4 = scmp.lt.u32.totalorder %s864_s9, %s860_s21  ;;  %p868_p0 = scmp.lt.u32.totalorder %s860_s21, %s1258_s25 }
  0x7b   : > { %p862_p11 = pnand %p861_p9, %p1399_p5 }
  0x7c   : > { %p867_p8 = por %p866_p4, %p865_p6 }
  0x7d   : > { %p863_p3 = pneg %p862_p11 }
  0x7e   : > { %p869_p7 = por %p868_p0, %p867_p8 }
  0x80   : > { %p870_p13 = pnand %p869_p7, %p863_p3 }
  0x82   : > { %873 = shalt.err (!%p870_p13)
}
  0x83   : > { %711 = dma.vmem_to_hbm [thread:$0]  (%p1399_p5), %s1260_s11, 64, %s1258_s25, %s1271_s5   ;;  %v414_v14 = vsel %vm366_vm7, %v407_v21, %v413_v28  ;;  %v441_v32 = vrot.slane %v440_v27, 4  ;;  %v436_v34 = vrot.slane %v435_v31, 2  ;;  %v425_v35 = vadd.f32 %v424_v29, %v423_v22 }
  0x84   : > { %v416_v33 = vadd.f32 %v414_v14, %v375_v25  ;;  %s1300_s21 = scalar_lea.hbm %s1385_s2, %s1249_s26  ;;  %v432_v36 = vadd.f32 %v431_v30, %v430_v23  ;;  %s458_s11 = scalar_lea.sflag [#allocation4], %s1191_s6 }
  0x85   : > { %v442_v37 = vadd.f32 %v441_v32, %v440_v27  ;;  %v437_v38 = vadd.f32 %v436_v34, %v435_v31  ;;  %s874_s25 = scalar_lea.vmem %s1304_s13, 64  ;;  %s1000_s27 = smov [#allocation7]  }
  0x86   : > { %417 = vst [vmem:[%s1209_s8] sm:$0xf] %v416_v33  ;;  %p875_p10 = scmp.ne.s32.totalorder %s1304_s13, %s874_s25  ;;  %s878_s18 = sshll.u32 %s1000_s27, 4  ;;  %s879_s18 = int_to_ptr.vmem [resolvable:$false] %s878_s18 }
  0x87   : > { %v443_v39 = vrot.slane %v442_v37, 2  ;;  %s880_s9 = scalar_lea.vmem %s879_s18, 128  ;;  %p881_p2 = scmp.lt.s32.totalorder %s1304_s13, %s879_s18 }
  0x88   : > { %p876_p12 = pnand %p875_p10, %p1399_p5  ;;  %p882_p9 = scmp.lt.s32.totalorder %s880_s9, %s874_s25 }
  0x8a   : > { %p877_p1 = pneg %p876_p12  ;;  %p883_p11 = por %p882_p9, %p881_p2 }
  0x8c   : > { %p884_p3 = pnand %p883_p11, %p877_p1 }
  0x8e   : > { %887 = shalt.err (!%p884_p3)
}
  0x8f   : > { %s888_s6 = scalar_lea.hbm %s1300_s21, 64  ;;  %s892_s10 = scalar_lea.hbm %s1385_s2, 128 }
  0x90   : > { %p889_p6 = scmp.ne.s32.totalorder %s1300_s21, %s888_s6  ;;  %p893_p0 = scmp.lt.u32.totalorder %s1300_s21, %s1385_s2 }
  0x91   : > { %p894_p7 = scmp.lt.u32.totalorder %s892_s10, %s888_s6  ;;  %p896_p10 = scmp.lt.u32.totalorder %s888_s6, %s1300_s21 }
  0x92   : > { %p890_p4 = pnand %p889_p6, %p1399_p5 }
  0x93   : > { %p895_p13 = por %p894_p7, %p893_p0 }
  0x94   : > { %p891_p8 = pneg %p890_p4 }
  0x95   : > { %p897_p12 = por %p896_p10, %p895_p13 }
  0x97   : > { %p898_p1 = pnand %p897_p12, %p891_p8 }
  0x99   : > { %901 = shalt.err (!%p898_p1)
}
  0x9a   : > { %710 = dma.vmem_to_hbm [thread:$0]  (%p1399_p5), %s1304_s13, 64, %s1300_s21, %s458_s11   ;;  %v438_v40 = vrot.slane %v437_v38, 1  ;;  %v444_v41 = vadd.f32 %v443_v39, %v442_v37  ;;  %v451_v42 = vsel %vm362_vm5, %v432_v36, %v425_v35  ;;  %v418_v46 = vld [vmem:[%s1212_s14] sm:$0xf] }
  0x9b   : > { %s510_s25 = sshll.u32 %s1212_s14, 4  ;;  %s508_s11 = scalar_lea.hbm %s1387_s4, %s1249_s26  ;;  %s1334_s25 = int_to_ptr.vmem [resolvable:$true] %s510_s25 }
  0x9c   : > { %v439_v43 = vadd.f32 %v438_v40, %v437_v38  ;;  %v445_v44 = vrot.slane %v444_v41, 1  ;;  %s902_s27 = scalar_lea.vmem %s1334_s25, 64  ;;  %s1001_s18 = smov [#allocation10]  }
  0x9d   : > { %p903_p2 = scmp.ne.s32.totalorder %s1334_s25, %s902_s27  ;;  %s906_s9 = sshll.u32 %s1001_s18, 4  ;;  %s907_s9 = int_to_ptr.vmem [resolvable:$false] %s906_s9 }
  0x9e   : > { %v452_v45 = vsel %vm364_vm6, %v439_v43, %v451_v42  ;;  %v446_v47 = vadd.f32 %v445_v44, %v444_v41  ;;  %s908_s6 = scalar_lea.vmem %s907_s9, 128  ;;  %p909_p3 = scmp.lt.s32.totalorder %s1334_s25, %s907_s9 }
  0x9f   : > { %p904_p9 = pnand %p903_p2, %p1399_p5  ;;  %p910_p6 = scmp.lt.s32.totalorder %s908_s6, %s902_s27 }
  0xa0   : > { %v453_v48 = vsel %vm366_vm7, %v446_v47, %v452_v45 }
  0xa1   : > { %v455_v49 = vadd.f32 %v453_v48, %v418_v46  ;;  %p905_p11 = pneg %p904_p9  ;;  %p911_p4 = por %p910_p6, %p909_p3 }
  0xa3   : > { %456 = vst [vmem:[%s1212_s14] sm:$0xf] %v455_v49  ;;  %p912_p8 = pnand %p911_p4, %p905_p11 }
  0xa5   : > { %915 = shalt.err (!%p912_p8)
}
  0xa6   : > { %s916_s8 = scalar_lea.hbm %s508_s11, 64  ;;  %s920_s24 = scalar_lea.hbm %s1387_s4, 128 }
  0xa7   : > { %p917_p0 = scmp.ne.s32.totalorder %s508_s11, %s916_s8  ;;  %p921_p10 = scmp.lt.u32.totalorder %s508_s11, %s1387_s4 }
  0xa8   : > { %p922_p12 = scmp.lt.u32.totalorder %s920_s24, %s916_s8  ;;  %p924_p2 = scmp.lt.u32.totalorder %s916_s8, %s508_s11 }
  0xa9   : > { %p918_p7 = pnand %p917_p0, %p1399_p5 }
  0xaa   : > { %p923_p1 = por %p922_p12, %p921_p10 }
  0xab   : > { %p919_p13 = pneg %p918_p7 }
  0xac   : > { %p925_p9 = por %p924_p2, %p923_p1 }
  0xae   : > { %p926_p11 = pnand %p925_p9, %p919_p13 }
  0xb0   : > { %929 = shalt.err (!%p926_p11)
}
  0xb1   : > { %712 = dma.vmem_to_hbm [thread:$0]  (%p1399_p5), %s1334_s25, 64, %s508_s11, %s1271_s5  }
  0xb2 PF: > { %s522_s7 = sand.u32 1, %s972_s15   ;;  %p1400_p3 = scmp.ne.s32.totalorder %s1393_s30, 0 }
  0xb3   : > { %p1401_p6 = scmp.ge.s32.totalorder %s992_s20, 2  ;;  %s523_s13 = scalar_lea.sflag [#allocation4], %s522_s7 }
  0xb5   : > { %p724_p4 = pnand %p1401_p6, %p1400_p3 }
  0xb7   : > { %963 = dma.done.wait (!%p724_p4), %s523_s13, 64  }
  0xb8   : > { %965 = vsyncadd (!%p724_p4), %s523_s13, 4294967232  ;;  %s531_s21 = sand.u32 1, %s681_s22  }
  0xb9   : > { %s532_s27 = scalar_lea.sflag [#allocation9], %s531_s21 }
  0xba   : > { %967 = dma.done.wait (!%p724_p4), %s532_s27, 128  }
  0xbb   : > { %969 = vsyncadd (!%p724_p4), %s532_s27, 4294967168  ;;  %s27_s20 = sadd.s32 1, %s992_s20   ;;  %s1402_s15 = smov %s976_s16 }
  0xbc   : > { %p24_p5 = scmp.ge.s32.totalorder %s27_s20, 4   ;;  %s1403_s16 = smov %s980_s17 }
  0xbd   : > { %s1404_s17 = smov %s1089_s29  ;;  %s1405_s18 = smov %s988_s19 }
  0xbe   : > { %s1406_s19 = smov %s1408_s23  ;;  %26 = sbr.rel (!%p24_p5) target bundleno = 10 (0xa), region = 122 }
  0xc5   :  { %546 = vsyncpa [#allocation3], 1 }
  0xc6   :  { %548 = vsyncpa [#allocation3 + $0x1], 1 }
  0xc7   :  { %549 = vsyncpa [#allocation6], 1 }
  0xc8   :  { %551 = vsyncpa [#allocation6 + $0x1], 1 }
  0xc9   :  { %552 = vsyncpa [#allocation4], 1 }
  0xca   :  { %554 = vsyncpa [#allocation4 + $0x1], 1 }
  0xcb   :  { %555 = vsyncpa [#allocation9], 1 }
  0xcc   :  { %557 = vsyncpa [#allocation9 + $0x1], 1 }

</bundles_post_ra>
